<compile_context>
chip_gen: v6e
topology: v6e:2x2x1
jax: 0.10.0
libtpu: 0.0.40
codegen_flags: <defaults>
</compile_context>

<pallas_src>
import functools

import jax
import jax.numpy as jnp
from jax.experimental import pallas as pl
from jax.experimental.pallas import tpu as pltpu

_GRANULE = 512        # tile granularity (multiple of 128 lanes / 2x256 MXU N)
_MAX_TILE_B = 16384   # cap keeps per-step VMEM a few MiB on every generation


def _round_up(x, m):
    return ((x + m - 1) // m) * m


def _choose_tile_b(batch):
    """Large batch tile, clamped to the batch; >=2 grid steps when worthwhile."""
    if batch <= 2 * _GRANULE:
        # Tiny batch: a single tile, padded by at most one granule.
        return _round_up(batch, _GRANULE)
    # Big enough to split: aim for >= 2 grid steps (v7x megacore) with tiles as
    # large as possible, capped so VMEM stays well inside the scoped default.
    tile = _round_up(pl.cdiv(batch, 2), _GRANULE)
    return min(tile, _MAX_TILE_B)


def _mlp_value_kernel(x_ref, p_ref, o_ref, *, e2, h):
    """x_ref: (2E, TILE_B) fused [state; target] with batch on lanes.
    p_ref: (H, 2E + 2H + 5) packed parameter slab (resident in VMEM).
    o_ref: (1, TILE_B) lane-dense output."""
    x = x_ref[...]                                   # (2E, TILE_B)

    # --- static slices of the packed parameter slab -------------------------
    w0 = p_ref[:, 0:e2]                              # (H, 2E)
    b0 = p_ref[:, e2:e2 + 1]                         # (H, 1)
    c = e2 + 1
    w1 = p_ref[:, c:c + h]                           # (H, H)
    b1 = p_ref[:, c + h:c + h + 1]                   # (H, 1)
    c += h + 1
    w2 = p_ref[:, c:c + h]                           # (H, H)
    b2 = p_ref[:, c + h:c + h + 1]                   # (H, 1)
    c += h + 1
    w3c = p_ref[:, c:c + 1]                          # (H, 1)  == w3.T
    b3 = p_ref[0:1, c + 1:c + 2]                     # (1, 1)

    # --- layer 0: single K=2E dot (concat already fused into x) -------------
    a = jnp.dot(w0, x, preferred_element_type=jnp.float32) + b0
    a = jnp.maximum(a, 0.0)
    # --- layer 1 -------------------------------------------------------------
    a = jnp.dot(w1, a, preferred_element_type=jnp.float32) + b1
    a = jnp.maximum(a, 0.0)
    # --- layer 2 -------------------------------------------------------------
    a = jnp.dot(w2, a, preferred_element_type=jnp.float32) + b2
    a = jnp.maximum(a, 0.0)
    # --- layer 3 (H -> 1) on the VPU/XLU instead of an M=1,K=H MXU pass ------
    y = jnp.sum(a * w3c, axis=0, keepdims=True) + b3  # (1, TILE_B)
    o_ref[...] = y.astype(o_ref.dtype)


@jax.jit
def mlp_value_forward(state, target, params):
    """state, target: (B, E) float32. Returns (B,) float32.

    params: ((w0,b0),(w1,b1),(w2,b2),(w3,b3)) with torch-style weight layout
            w_i: (out_features, in_features), b_i: (out_features,).
    """
    B, E = state.shape
    (w0, b0), (w1, b1), (w2, b2), (w3, b3) = params
    H = w0.shape[0]
    E2 = 2 * E

    tile_b = _choose_tile_b(B)
    num_tiles = pl.cdiv(B, tile_b)
    B_pad = num_tiles * tile_b

    # Single fused wrapper pass: concat -> pad -> transpose. One read of each
    # input, one (2E, B_pad) write, one XLA fusion. Layer 0 then needs only one
    # K=2E dot and a single batch-tiled input stream in the kernel.
    x = jnp.concatenate([state, target], axis=-1).astype(jnp.float32)  # (B, 2E)
    x = jnp.pad(x, ((0, B_pad - B), (0, 0)))                           # (B_pad, 2E)
    x_t = x.T                                                          # (2E, B_pad)

    # Pack every weight/bias into one tiny resident f32 slab: (H, 2E + 2H + 5).
    p = jnp.concatenate(
        [
            w0,                                        # (H, 2E)
            b0.reshape(H, 1),                          # (H, 1)
            w1, b1.reshape(H, 1),                      # (H, H), (H, 1)
            w2, b2.reshape(H, 1),                      # (H, H), (H, 1)
            w3.T,                                      # (H, 1)
            jnp.broadcast_to(b3.reshape(1, 1), (H, 1)),  # (H, 1)
        ],
        axis=1,
    ).astype(jnp.float32)

    flops = B_pad * (2 * E2 * H + 4 * H * H + 6 * H + 2)
    bytes_accessed = 4 * (E2 * B_pad + B_pad + p.size)

    out = pl.pallas_call(
        functools.partial(_mlp_value_kernel, e2=E2, h=H),
        out_shape=jax.ShapeDtypeStruct((1, B_pad), jnp.float32),
        grid=(num_tiles,),
        in_specs=[
            pl.BlockSpec((E2, tile_b), lambda i: (0, i)),  # fused input, batch-tiled
            pl.BlockSpec(p.shape, lambda i: (0, 0)),       # param slab, resident
        ],
        out_specs=pl.BlockSpec((1, tile_b), lambda i: (0, i)),
        compiler_params=pltpu.CompilerParams(
            dimension_semantics=("parallel",),  # shards batch tiles on v7x megacore
        ),
        cost_estimate=pl.CostEstimate(
            flops=flops, transcendentals=0, bytes_accessed=bytes_accessed
        ),
    )(x_t, p)

    # (1, B_pad) -> (B,)   (matches .squeeze(dim=-1) of the torch module)
    return out[0, :B]


def init_params(key, embedding_dim=2, hidden_dim=10):
    """Deterministic synthetic parameters, torch nn.Linear layout:
    weight (out_features, in_features), bias (out_features,)."""
    dims = [
        (embedding_dim * 2, hidden_dim),
        (hidden_dim, hidden_dim),
        (hidden_dim, hidden_dim),
        (hidden_dim, 1),
    ]
    params = []
    for fan_in, fan_out in dims:
        key, kw, kb = jax.random.split(key, 3)
        bound = 1.0 / jnp.sqrt(fan_in)
        w = jax.random.uniform(kw, (fan_out, fan_in), jnp.float32, -bound, bound)
        b = jax.random.uniform(kb, (fan_out,), jnp.float32, -bound, bound)
        params.append((w, b))
    return params


def mlp_value_ref(state, target, params):
    """Pure-JAX reference (mirrors the torch forward exactly)."""
    x = jnp.concatenate([state, target], axis=-1)
    (w0, b0), (w1, b1), (w2, b2), (w3, b3) = params
    h = jnp.maximum(x @ w0.T + b0, 0.0)
    h = jnp.maximum(h @ w1.T + b1, 0.0)
    h = jnp.maximum(h @ w2.T + b2, 0.0)
    y = h @ w3.T + b3
    return y[:, 0]


if __name__ == "__main__":
    key = jax.random.PRNGKey(0)
    k_params, k_data = jax.random.split(key)

    embedding_dim = 2
    hidden_dim = 10
    params = init_params(k_params, embedding_dim, hidden_dim)

    # batch=300 -> one padded 512-wide tile; batch=1500 -> a 2-step grid.
    for batch in (300, 1500):
        ks, kt = jax.random.split(jax.random.fold_in(k_data, batch))
        state = jax.random.normal(ks, (batch, embedding_dim), jnp.float32)
        target = jax.random.normal(kt, (batch, embedding_dim), jnp.float32)

        out = jax.block_until_ready(mlp_value_forward(state, target, params))
        expected = mlp_value_ref(state, target, params)
        assert out.shape == (batch,), out.shape
        assert jnp.allclose(out, expected, atol=1e-5, rtol=1e-5)

    print("KERNEL_OK")
</pallas_src>

<mosaic_0001>
module attributes {stable_mosaic.version = 11 : i64} {
  func.func @_mlp_value_kernel(%arg0: i32, %arg1: memref<4x512xf32, #tpu.memory_space<vmem>>, %arg2: memref<10x29xf32, #tpu.memory_space<vmem>>, %arg3: memref<1x512xf32, #tpu.memory_space<vmem>>) attributes {dimension_semantics = [#tpu.dimension_semantics<parallel>], iteration_bounds = array<i64: 1>, scalar_prefetch = 0 : i64, scratch_operands = 0 : i64, tpu.core_type = #tpu.core_type<tc>, window_params = [{transform_indices = @transform_0, window_bounds = array<i64: 4, 512>}, {pipeline_mode = #tpu.pipeline_mode<synchronous>, transform_indices = @transform_1, window_bounds = array<i64: 10, 29>}, {transform_indices = @transform_2, window_bounds = array<i64: 1, 512>}]} {
    %c0 = arith.constant 0 : index
    %c0_0 = arith.constant 0 : index
    %0 = vector.load %arg1[%c0, %c0_0] : memref<4x512xf32, #tpu.memory_space<vmem>>, vector<4x512xf32>
    %c0_1 = arith.constant 0 : index
    %c0_2 = arith.constant 0 : index
    %1 = vector.load %arg2[%c0_1, %c0_2] : memref<10x29xf32, #tpu.memory_space<vmem>>, vector<10x4xf32>
    %c0_3 = arith.constant 0 : index
    %c4 = arith.constant 4 : index
    %2 = vector.load %arg2[%c0_3, %c4] : memref<10x29xf32, #tpu.memory_space<vmem>>, vector<10x1xf32>
    %c0_4 = arith.constant 0 : index
    %c5 = arith.constant 5 : index
    %3 = vector.load %arg2[%c0_4, %c5] : memref<10x29xf32, #tpu.memory_space<vmem>>, vector<10x10xf32>
    %c0_5 = arith.constant 0 : index
    %c15 = arith.constant 15 : index
    %4 = vector.load %arg2[%c0_5, %c15] : memref<10x29xf32, #tpu.memory_space<vmem>>, vector<10x1xf32>
    %c0_6 = arith.constant 0 : index
    %c16 = arith.constant 16 : index
    %5 = vector.load %arg2[%c0_6, %c16] : memref<10x29xf32, #tpu.memory_space<vmem>>, vector<10x10xf32>
    %c0_7 = arith.constant 0 : index
    %c26 = arith.constant 26 : index
    %6 = vector.load %arg2[%c0_7, %c26] : memref<10x29xf32, #tpu.memory_space<vmem>>, vector<10x1xf32>
    %c0_8 = arith.constant 0 : index
    %c27 = arith.constant 27 : index
    %7 = vector.load %arg2[%c0_8, %c27] : memref<10x29xf32, #tpu.memory_space<vmem>>, vector<10x1xf32>
    %c0_9 = arith.constant 0 : index
    %c28 = arith.constant 28 : index
    %8 = vector.load %arg2[%c0_9, %c28] : memref<10x29xf32, #tpu.memory_space<vmem>>, vector<1x1xf32>
    %cst = arith.constant dense<0.000000e+00> : vector<10x512xf32>
    %9 = tpu.matmul %1, %0, %cst {dimension_numbers = #tpu.dot_dimension_numbers<[1], [0], [0], [1], [0, 0, 1, 1], [], []>} : vector<10x4xf32>, vector<4x512xf32>, vector<10x512xf32> -> vector<10x512xf32>
    %10 = vector.broadcast %2 : vector<10x1xf32> to vector<10x512xf32>
    %11 = arith.addf %9, %10 : vector<10x512xf32>
    %cst_10 = arith.constant 0.000000e+00 : f32
    %12 = vector.broadcast %cst_10 : f32 to vector<10x512xf32>
    %13 = arith.maximumf %11, %12 : vector<10x512xf32>
    %cst_11 = arith.constant dense<0.000000e+00> : vector<10x512xf32>
    %14 = tpu.matmul %3, %13, %cst_11 {dimension_numbers = #tpu.dot_dimension_numbers<[1], [0], [0], [1], [0, 0, 1, 1], [], []>} : vector<10x10xf32>, vector<10x512xf32>, vector<10x512xf32> -> vector<10x512xf32>
    %15 = vector.broadcast %4 : vector<10x1xf32> to vector<10x512xf32>
    %16 = arith.addf %14, %15 : vector<10x512xf32>
    %cst_12 = arith.constant 0.000000e+00 : f32
    %17 = vector.broadcast %cst_12 : f32 to vector<10x512xf32>
    %18 = arith.maximumf %16, %17 : vector<10x512xf32>
    %cst_13 = arith.constant dense<0.000000e+00> : vector<10x512xf32>
    %19 = tpu.matmul %5, %18, %cst_13 {dimension_numbers = #tpu.dot_dimension_numbers<[1], [0], [0], [1], [0, 0, 1, 1], [], []>} : vector<10x10xf32>, vector<10x512xf32>, vector<10x512xf32> -> vector<10x512xf32>
    %20 = vector.broadcast %6 : vector<10x1xf32> to vector<10x512xf32>
    %21 = arith.addf %19, %20 : vector<10x512xf32>
    %cst_14 = arith.constant 0.000000e+00 : f32
    %22 = vector.broadcast %cst_14 : f32 to vector<10x512xf32>
    %23 = arith.maximumf %21, %22 : vector<10x512xf32>
    %24 = vector.broadcast %7 : vector<10x1xf32> to vector<10x512xf32>
    %25 = arith.mulf %23, %24 : vector<10x512xf32>
    %cst_15 = arith.constant dense<0.000000e+00> : vector<512xf32>
    %26 = vector.multi_reduction <add>, %25, %cst_15 [0] : vector<10x512xf32> to vector<512xf32>
    %27 = vector.shape_cast %26 : vector<512xf32> to vector<1x512xf32>
    %28 = vector.broadcast %8 : vector<1x1xf32> to vector<1x512xf32>
    %29 = arith.addf %27, %28 : vector<1x512xf32>
    %c0_16 = arith.constant 0 : index
    %c0_17 = arith.constant 0 : index
    %30 = vector.load %arg3[%c0_16, %c0_17] : memref<1x512xf32, #tpu.memory_space<vmem>>, vector<1x512xf32>
    tpu.vector_store %arg3[%c0_16, %c0_17], %29 {strides = array<i32>} : memref<1x512xf32, #tpu.memory_space<vmem>>, vector<1x512xf32>,
    return
  }
  func.func @transform_0(%arg0: i32) -> (i32, i32) {
    %c0_i32 = arith.constant 0 : i32
    %c0_i32_0 = arith.constant 0 : i32
    return %c0_i32, %arg0 : i32, i32
  }
  func.func @transform_1(%arg0: i32) -> (i32, i32) {
    %c0_i32 = arith.constant 0 : i32
    %c0_i32_0 = arith.constant 0 : i32
    %c0_i32_1 = arith.constant 0 : i32
    return %c0_i32, %c0_i32_0 : i32, i32
  }
  func.func @transform_2(%arg0: i32) -> (i32, i32) {
    %c0_i32 = arith.constant 0 : i32
    %c0_i32_0 = arith.constant 0 : i32
    return %c0_i32, %arg0 : i32, i32
  }
}

</mosaic_0001>

<bundles_post_ra>
// kernel: mlp_value_forward.1
= control target key start
LH: loop header
LB: loop body
LE: loop exit
PB: predicated region body
PF: predicated region fallthrough
CT: control target
= control target key end

     0   :  { %vm35_vm0 = vcmask 1043456   ;;  %v725_v2 = vmov 0.0   ;;  %v726_v7 = vmov 4   ;;  %vm30_vm1 = vcmask 31744   ;;  %s729_s17 = smov 112   ;;  %s823_s0 = inlined_call_operand.vmem [shape: f32[4,512], index: 0, kind: input, shape index: {}]   ;;  %s824_s1 = inlined_call_operand.vmem [shape: f32[10,29], index: 1, kind: input, shape index: {}]   ;;  %s825_s2 = inlined_call_operand.vmem [shape: f32[1,512], index: 2, kind: output, shape index: {}]  }
   0x1   :  { %v11_v0 = vld [vmem:[%s823_s0] sm:$0xff]  ;;  %v12_v1 = vld [vmem:[%s823_s0 + $0x8] sm:$0xff]  ;;  %108 = vmatprep.mubr.f32.mxu0 %v725_v2  ;;  %185 = vmatprep.mubr.f32.mxu1 %v725_v2  ;;  %s727_s0 = smov 123   ;;  %v728_v8 = vmov 15   ;;  %vm223_vm2 = vcmask 1041408   ;;  %vm218_vm3 = vcmask 80896  }
   0x2   :  { %v760_v3 = vld [vmem:[%s824_s1] sm:$0xff]  ;;  %v28_v4 = vcombine.high %v11_v0, %v11_v0  ;;  %v29_v5 = vcombine.high %v12_v1, %v12_v1  ;;  %v765_v6 = vld [vmem:[%s824_s1 + $0x8] sm:$0x3]  ;;  %716 = vset.pattern.permute.xlu0 %v726_v7  ;;  %718 = vset.pattern.permute.xlu1 %v728_v8  ;;  %v730_v37 = vmov 26   ;;  %v731_v39 = vmov 27  }
   0x3   :  { %214 = vrot.lane.b32.xlu1 %v760_v3, %s727_s0  ;;  %23 = vperm.xlu0 %716, %v765_v6   ;;  %v15_v38 = vld [vmem:[%s824_s1] sm:$0x1]  ;;  %v732_v40 = vmov 28  }
   0x4   :  { %683 = vmatprep.subr.msk.mxu0 %vm35_vm0, %v28_v4  ;;  %687 = vmatprep.subr.msk.mxu1 %vm35_vm0, %v29_v5 }
   0x5   :  { %684 = vmatpush1.msk.msra.mxu0 %vm35_vm0, %v11_v0  ;;  %688 = vmatpush1.msk.msra.mxu1 %vm35_vm0, %v12_v1 }
   0x6   :  { %685 = vmatmul.mubr.msk.f32.vlgmr.msra.gmra.mxu0 %vm30_vm1, %v760_v3  ;;  %689 = vmatmul.mubr.msk.f32.vlgmr.msra.gmra.mxu1 %vm30_vm1, %v760_v3 }
   0x7   :  { %114 = vmatprep.mubr.f32.mxu0 %v725_v2  ;;  %191 = vmatprep.mubr.f32.mxu1 %v725_v2 }
   0x8   :  { %18 = vperm.xlu0 %716, %v760_v3   ;;  %216 = vrot.lane.b32.xlu1 %v765_v6, %s727_s0 }
   0xa   :  { %686 = vmatmul.mubr.msk.f32.gmra.mxu0 %vm30_vm1, %v765_v6  ;;  %690 = vmatmul.mubr.msk.f32.gmra.mxu1 %vm30_vm1, %v765_v6 }
   0xb   :  { %300 = vmatprep.mubr.f32.mxu0 %v725_v2  ;;  %377 = vmatprep.mubr.f32.mxu1 %v725_v2 }
   0xc   :  { %717 = vset.pattern.permute.xlu0 %v728_v8  ;;  %207 = vperm.xlu1 %718, %v760_v3  }
   0xd   :  { %211 = vperm.xlu0 %717, %v765_v6  }
  0x10   :  { %406 = vrot.lane.b32.xlu1 %v760_v3, %s729_s17 }
  0x11   :  { %408 = vrot.lane.b32.xlu0 %v765_v6, %s729_s17  ;;  %719 = vset.pattern.permute.xlu1 %v730_v37 }
  0x12   :  { %720 = vset.pattern.permute.xlu0 %v730_v37 }
  0x14   :  { %403 = vperm.xlu1 %719, %v765_v6  }
  0x15   :  { %399 = vperm.xlu0 %720, %v760_v3  }
  0x18   :  { %721 = vset.pattern.permute.xlu1 %v731_v39 }
  0x19   :  { %722 = vset.pattern.permute.xlu0 %v732_v40  ;;  %593 = vperm.xlu1 %721, %v765_v6  }
  0x1a   :  { %638 = vperm.xlu0 %722, %v15_v38  }
  0x1d   :  { %589 = vperm.xlu1 %721, %v760_v3  }
  0x75   :  { %v215_v31 = vpop.permute.xlu1 %214 }
  0x7a   :  { %v217_v36 = vpop.permute.xlu1 %216 }
  0x7e   :  { %v24_v9 = vpop.permute.xlu0 %23 }
  0x83   :  { %v19_v16 = vpop.permute.xlu0 %18 }
  0x87   :  { %v208_v48 = vpop.permute.xlu1 %207 }
  0x88   :  { %v212_v45 = vpop.permute.xlu0 %211 }
  0x8b   :  { %v407_v4 = vpop.permute.xlu1 %406 }
  0x8c   :  { %v409_v5 = vpop.permute.xlu0 %408 }
  0x8f   :  { %v404_v6 = vpop.permute.xlu1 %403 }
  0x90   :  { %v400_v7 = vpop.permute.xlu0 %399 }
  0xc6   :  { %v110_v10 = vpop.f32.mrf.mxu0  ;;  %v187_v11 = vpop.f32.mrf.mxu1 }
  0xc7   :  { %v111_v25 = vadd.f32 %v110_v10, %v19_v16  ;;  %v188_v26 = vadd.f32 %v187_v11, %v19_v16  ;;  %v594_v10 = vpop.permute.xlu1 %593 }
  0xc8   :  { %v112_v12 = vpop.f32.mrf.mxu0  ;;  %v189_v13 = vpop.f32.mrf.mxu1 }
  0xc9   :  { %v113_v21 = vadd.f32 %v112_v12, %v19_v16  ;;  %v190_v22 = vadd.f32 %v189_v13, %v19_v16  ;;  %v198_v34 = vmax.f32 %v111_v25, 0.0  ;;  %v200_v35 = vmax.f32 %v188_v26, 0.0 }
  0xca   :  { %v116_v14 = vpop.f32.mrf.mxu0  ;;  %v193_v15 = vpop.f32.mrf.mxu1 }
  0xcb   :  { %v117_v17 = vadd.f32 %v116_v14, %v24_v9  ;;  %v194_v18 = vadd.f32 %v193_v15, %v24_v9  ;;  %v199_v32 = vmax.f32 %v113_v21, 0.0  ;;  %v201_v33 = vmax.f32 %v190_v22, 0.0 }
  0xcc   :  { %v118_v19 = vpop.f32.mrf.mxu0  ;;  %v195_v20 = vpop.f32.mrf.mxu1 }
  0xcd   :  { %v119_v23 = vadd.f32 %v118_v19, %v24_v9  ;;  %v196_v24 = vadd.f32 %v195_v20, %v24_v9  ;;  %v202_v29 = vmax.f32 %v117_v17, 0.0  ;;  %v204_v30 = vmax.f32 %v194_v18, 0.0 }
  0xcf   :  { %v203_v27 = vmax.f32 %v119_v23, 0.0  ;;  %v205_v28 = vmax.f32 %v196_v24, 0.0 }
  0xd1   :  { %691 = vmatprep.subr.msk.mxu0 %vm223_vm2, %v203_v27  ;;  %695 = vmatprep.subr.msk.mxu1 %vm223_vm2, %v205_v28  ;;  %v590_v28 = vpop.permute.xlu1 %589 }
  0xd2   :  { %692 = vmatpush1.msk.msra.mxu0 %vm223_vm2, %v202_v29  ;;  %696 = vmatpush1.msk.msra.mxu1 %vm223_vm2, %v204_v30 }
  0xd3   :  { %266 = vmatprep.subr.mxu0 %v199_v32  ;;  %343 = vmatprep.subr.mxu1 %v201_v33 }
  0xd4   :  { %267 = vmatpush1.msra.mxu0 %v198_v34  ;;  %344 = vmatpush1.msra.mxu1 %v200_v35 }
  0xd5   :  { %693 = vmatmul.mubr.msk.f32.vlgmr.msra.gmra.mxu0 %vm218_vm3, %v215_v31  ;;  %697 = vmatmul.mubr.msk.f32.vlgmr.msra.gmra.mxu1 %vm218_vm3, %v215_v31 }
  0xd6   :  { %306 = vmatprep.mubr.f32.mxu0 %v725_v2  ;;  %383 = vmatprep.mubr.f32.mxu1 %v725_v2 }
  0xd9   :  { %694 = vmatmul.mubr.msk.f32.gmra.mxu0 %vm218_vm3, %v217_v36  ;;  %698 = vmatmul.mubr.msk.f32.gmra.mxu1 %vm218_vm3, %v217_v36 }
  0xda   :  { %490 = vmatprep.mubr.f32.mxu0 %v725_v2  ;;  %567 = vmatprep.mubr.f32.mxu1 %v725_v2 }
 0x195   :  { %v302_v41 = vpop.f32.mrf.mxu0  ;;  %v379_v42 = vpop.f32.mrf.mxu1 }
 0x196   :  { %v303_v57 = vadd.f32 %v302_v41, %v208_v48  ;;  %v380_v58 = vadd.f32 %v379_v42, %v208_v48 }
 0x197   :  { %v304_v43 = vpop.f32.mrf.mxu0  ;;  %v381_v44 = vpop.f32.mrf.mxu1 }
 0x198   :  { %v305_v53 = vadd.f32 %v304_v43, %v208_v48  ;;  %v382_v54 = vadd.f32 %v381_v44, %v208_v48  ;;  %v390_v1 = vmax.f32 %v303_v57, 0.0  ;;  %v392_v3 = vmax.f32 %v380_v58, 0.0 }
 0x199   :  { %v308_v46 = vpop.f32.mrf.mxu0  ;;  %v385_v47 = vpop.f32.mrf.mxu1 }
 0x19a   :  { %v309_v49 = vadd.f32 %v308_v46, %v212_v45  ;;  %v386_v50 = vadd.f32 %v385_v47, %v212_v45  ;;  %v391_v63 = vmax.f32 %v305_v53, 0.0  ;;  %v393_v0 = vmax.f32 %v382_v54, 0.0 }
 0x19b   :  { %v310_v51 = vpop.f32.mrf.mxu0  ;;  %v387_v52 = vpop.f32.mrf.mxu1 }
 0x19c   :  { %v311_v55 = vadd.f32 %v310_v51, %v212_v45  ;;  %v388_v56 = vadd.f32 %v387_v52, %v212_v45  ;;  %v394_v61 = vmax.f32 %v309_v49, 0.0  ;;  %v396_v62 = vmax.f32 %v386_v50, 0.0 }
 0x19e   :  { %v395_v59 = vmax.f32 %v311_v55, 0.0  ;;  %v397_v60 = vmax.f32 %v388_v56, 0.0 }
 0x1a0   :  { %699 = vmatprep.subr.msk.mxu0 %vm223_vm2, %v395_v59  ;;  %703 = vmatprep.subr.msk.mxu1 %vm223_vm2, %v397_v60  ;;  %v733_v59 = vmov 1966171168  }
 0x1a1   :  { %700 = vmatpush1.msk.msra.mxu0 %vm223_vm2, %v394_v61  ;;  %704 = vmatpush1.msk.msra.mxu1 %vm223_vm2, %v396_v62  ;;  %v652_v60 = vunpack.c.l.s4 %v733_v59  ;;  %v654_v61 = vlaneseq }
 0x1a2   :  { %456 = vmatprep.subr.mxu0 %v391_v63  ;;  %533 = vmatprep.subr.mxu1 %v393_v0 }
 0x1a3   :  { %457 = vmatpush1.msra.mxu0 %v390_v1  ;;  %534 = vmatpush1.msra.mxu1 %v392_v3  ;;  %vm676_vm4 = vcmp.lt.s32.totalorder %v654_v61, 512 }
 0x1a4   :  { %701 = vmatmul.mubr.msk.f32.vlgmr.msra.gmra.mxu0 %vm218_vm3, %v407_v4  ;;  %705 = vmatmul.mubr.msk.f32.vlgmr.msra.gmra.mxu1 %vm218_vm3, %v407_v4 }
 0x1a5   :  { %496 = vmatprep.mubr.f32.mxu0 %v725_v2  ;;  %573 = vmatprep.mubr.f32.mxu1 %v725_v2 }
 0x1a8   :  { %702 = vmatmul.mubr.msk.f32.gmra.mxu0 %vm218_vm3, %v409_v5  ;;  %706 = vmatmul.mubr.msk.f32.gmra.mxu1 %vm218_vm3, %v409_v5 }
 0x264   :  { %v492_v8 = vpop.f32.mrf.mxu0  ;;  %v569_v9 = vpop.f32.mrf.mxu1 }
 0x265   :  { %v493_v13 = vadd.f32 %v492_v8, %v400_v7  ;;  %v570_v14 = vadd.f32 %v569_v9, %v400_v7  ;;  %v655_v8 = vshrl.u32 %v654_v61, 7 }
 0x266   :  { %v494_v11 = vpop.f32.mrf.mxu0  ;;  %v571_v12 = vpop.f32.mrf.mxu1 }
 0x267   :  { %v495_v17 = vadd.f32 %v494_v11, %v400_v7  ;;  %v572_v18 = vadd.f32 %v571_v12, %v400_v7  ;;  %v580_v22 = vmax.f32 %v493_v13, 0.0  ;;  %v582_v23 = vmax.f32 %v570_v14, 0.0  ;;  %v639_v13 = vpop.permute.xlu0 %638 }
 0x268   :  { %v498_v15 = vpop.f32.mrf.mxu0  ;;  %v575_v16 = vpop.f32.mrf.mxu1  ;;  %v653_v7 = vunpack.c.0.s8 %v652_v60 }
 0x269   :  { %v499_v19 = vadd.f32 %v498_v15, %v404_v6  ;;  %v576_v20 = vadd.f32 %v575_v16, %v404_v6  ;;  %v581_v29 = vmax.f32 %v495_v17, 0.0  ;;  %v583_v30 = vmax.f32 %v572_v18, 0.0 }
 0x26a   :  { %v500_v2 = vpop.f32.mrf.mxu0  ;;  %v577_v21 = vpop.f32.mrf.mxu1  ;;  %v596_v35 = vmul.f32 %v590_v28, %v580_v22  ;;  %v598_v36 = vmul.f32 %v590_v28, %v582_v23  ;;  %v656_v16 = vsub.s32 %v653_v7, %v655_v8 }
 0x26b   :  { %v584_v24 = vmax.f32 %v499_v19, 0.0  ;;  %v586_v25 = vmax.f32 %v576_v20, 0.0  ;;  %v501_v26 = vadd.f32 %v500_v2, %v404_v6  ;;  %v578_v27 = vadd.f32 %v577_v21, %v404_v6 }
 0x26c   :  { %v597_v41 = vmul.f32 %v590_v28, %v581_v29  ;;  %v599_v42 = vmul.f32 %v590_v28, %v583_v30 }
 0x26d   :  { %v600_v31 = vmul.f32 %v594_v10, %v584_v24  ;;  %v602_v32 = vmul.f32 %v594_v10, %v586_v25  ;;  %v585_v33 = vmax.f32 %v501_v26, 0.0  ;;  %v587_v34 = vmax.f32 %v578_v27, 0.0 }
 0x26f   :  { %v601_v37 = vmul.f32 %v594_v10, %v585_v33  ;;  %v603_v38 = vmul.f32 %v594_v10, %v587_v34  ;;  %v604_v39 = vsel %vm223_vm2, %v600_v31, 0.0  ;;  %v620_v40 = vsel %vm223_vm2, %v602_v32, 0.0 }
 0x270   :  { %v605_v43 = vadd.f32 %v604_v39, %v596_v35  ;;  %v621_v44 = vadd.f32 %v620_v40, %v598_v36 }
 0x271   :  { %v612_v45 = vsel %vm223_vm2, %v601_v37, 0.0  ;;  %v628_v46 = vsel %vm223_vm2, %v603_v38, 0.0 }
 0x272   :  { %v606_v47 = vrot.slane %v605_v43, 4  ;;  %v613_v48 = vadd.f32 %v612_v45, %v597_v41  ;;  %v622_v49 = vrot.slane %v621_v44, 4  ;;  %v629_v50 = vadd.f32 %v628_v46, %v599_v42 }
 0x274   :  { %v607_v51 = vadd.f32 %v606_v47, %v605_v43  ;;  %v614_v52 = vrot.slane %v613_v48, 4  ;;  %v623_v53 = vadd.f32 %v622_v49, %v621_v44  ;;  %v630_v54 = vrot.slane %v629_v50, 4 }
 0x276   :  { %v615_v55 = vadd.f32 %v614_v52, %v613_v48  ;;  %v631_v56 = vadd.f32 %v630_v54, %v629_v50  ;;  %v608_v57 = vrot.slane %v607_v51, 2  ;;  %v624_v58 = vrot.slane %v623_v53, 2 }
 0x278   :  { %v609_v62 = vadd.f32 %v608_v57, %v607_v51  ;;  %v616_v63 = vrot.slane %v615_v55, 2  ;;  %v625_v0 = vadd.f32 %v624_v58, %v623_v53  ;;  %v632_v1 = vrot.slane %v631_v56, 2 }
 0x27a   :  { %v610_v3 = vrot.slane %v609_v62, 1  ;;  %v617_v4 = vadd.f32 %v616_v63, %v615_v55  ;;  %v626_v5 = vrot.slane %v625_v0, 1  ;;  %v633_v6 = vadd.f32 %v632_v1, %v631_v56 }
 0x27c   :  { %v611_v9 = vadd.f32 %v610_v3, %v609_v62  ;;  %v618_v10 = vrot.slane %v617_v4, 1  ;;  %v627_v11 = vadd.f32 %v626_v5, %v625_v0  ;;  %v634_v12 = vrot.slane %v633_v6, 1 }
 0x27e   :  { %v619_v14 = vadd.f32 %v618_v10, %v617_v4  ;;  %v635_v15 = vadd.f32 %v634_v12, %v633_v6  ;;  %v641_v17 = vadd.f32 %v639_v13, %v611_v9  ;;  %v643_v19 = vadd.f32 %v639_v13, %v627_v11 }
 0x280   :  { %v642_v18 = vadd.f32 %v639_v13, %v619_v14  ;;  %v644_v20 = vadd.f32 %v639_v13, %v635_v15 }
 0x282   :  { %v649_v2 = vcombine.low %v641_v17, %v642_v18  ;;  %v650_v21 = vcombine.low %v643_v19, %v644_v20 }
 0x284   :  { %v657_v22 = vrot.slane %v649_v2, %v656_v16  ;;  %v664_v23 = vrot.slane %v650_v21, %v656_v16 }
 0x286   :  { %v665_v24 = vcombine.low %v657_v22, %v664_v23 }
 0x288   :  { %v672_v25 = vrot.slane %v665_v24, %v656_v16 }
 0x28a   :  { %678 = vst.msk [vmem:[%s825_s2] sm:$0xf] %vm676_vm4, %v672_v25 }

</bundles_post_ra>
